<compile_context>
chip_gen: v5e
topology: v5e:2x2
jax: 0.10.0
libtpu: 0.0.40
codegen_flags: <defaults>
</compile_context>

<pallas_src>
import functools

import jax
import jax.numpy as jnp
from jax.experimental import pallas as pl
from jax.experimental.pallas import tpu as pltpu


# ----------------------------- kernel --------------------------------------

def _softmax_last(z):
    """Numerically stable softmax over the last axis (== torch dim=1)."""
    m = jnp.max(z, axis=-1, keepdims=True)
    e = jnp.exp(z - m)
    d = jnp.sum(e, axis=-1, keepdims=True)
    r = pl.reciprocal(d, approx=True)      # EUP slot (otherwise idle)
    r = r * (2.0 - d * r)                  # one Newton step -> ~f32 accuracy
    return e * r


def surenet_kernel(mut_ref, trait_ref,              # (B, 96), (B, T)
                   wtm_ref, wtt_ref, bt_ref,        # (96, Dp), (T, Dp), (1, Dp)
                   gw1_ref, gb1_ref,                # (Dp, H), (1, H)
                   gwo_ref, gbo_ref,                # (H, E), (1, E)
                   ew1_ref, eb1_ref,                # (Dp, E*H), (1, E*H)
                   ew2_ref, eb2_ref,                # (E*H, E*H), (1, E*H)  block-diag
                   ew3_ref, eb3_ref,                # (E*H, E*H), (1, E*H)  block-diag
                   ewo_ref, ebo_ref,                # (E*H, E*S), (1, E*S)  block-diag
                   out_ref,                         # (B, S)
                   *, num_experts, num_signatures):
    f32 = jnp.float32

    # input_transform + ReLU, with torch.cat fused into two matmuls.
    h = (jnp.dot(mut_ref[...], wtm_ref[...], preferred_element_type=f32)
         + jnp.dot(trait_ref[...], wtt_ref[...], preferred_element_type=f32)
         + bt_ref[...])
    h = jnp.maximum(h, 0.0)                                       # (B, Dp)

    # gating network: fc1 -> ReLU -> output -> softmax over experts.
    g = jnp.maximum(
        jnp.dot(h, gw1_ref[...], preferred_element_type=f32) + gb1_ref[...], 0.0)
    gate = _softmax_last(
        jnp.dot(g, gwo_ref[...], preferred_element_type=f32) + gbo_ref[...])  # (B, E)

    # fused expert stack: 4 matmuls total (block-diagonal hidden layers keep
    # the experts independent).
    a = jnp.maximum(
        jnp.dot(h, ew1_ref[...], preferred_element_type=f32) + eb1_ref[...], 0.0)
    a = jnp.maximum(
        jnp.dot(a, ew2_ref[...], preferred_element_type=f32) + eb2_ref[...], 0.0)
    a = jnp.maximum(
        jnp.dot(a, ew3_ref[...], preferred_element_type=f32) + eb3_ref[...], 0.0)
    logits = jnp.dot(a, ewo_ref[...], preferred_element_type=f32) + ebo_ref[...]  # (B, E*S)

    # Per-expert softmax + gate-weighted sum.  Static lane slices are used
    # instead of a lane-splitting (B, E*S)->(B, E, S) reshape: guaranteed to
    # lower, and the VALU work here is filler next to the fused matmuls.
    S = num_signatures
    acc = jnp.zeros((logits.shape[0], S), dtype=f32)
    for e in range(num_experts):
        p = _softmax_last(logits[:, e * S:(e + 1) * S])           # (B, S)
        acc = acc + gate[:, e:e + 1] * p
    out_ref[...] = acc.astype(out_ref.dtype)


# ------------------------ weight fusion (host side, once) --------------------

def _block_diag(blocks):
    e = len(blocks)
    r, c = blocks[0].shape
    out = jnp.zeros((e * r, e * c), blocks[0].dtype)
    for i, b in enumerate(blocks):
        out = out.at[i * r:(i + 1) * r, i * c:(i + 1) * c].set(b)
    return out


def fuse_params(p, num_mut_categories=96):
    """Repack per-layer (in,out) params into MXU-friendly fused tensors."""
    D = p["wt"].shape[0]                       # 96 + num_traits
    E = p["ew1"].shape[0]
    Dp = -(-D // 128) * 128                    # pad transform width to lane tiles

    pad_out = lambda w: jnp.pad(w, ((0, 0), (0, Dp - w.shape[1])))   # output cols
    pad_in = lambda w: jnp.pad(w, ((0, Dp - w.shape[0]), (0, 0)))    # input rows

    wt = pad_out(p["wt"])                      # (D, Dp), extra cols are zero
    bt = pad_out(p["bt"])                      # (1, Dp)
    wtm = wt[:num_mut_categories]              # (96, Dp)
    wtt = wt[num_mut_categories:]              # (T,  Dp)

    gw1 = pad_in(p["gw1"])                     # (Dp, H)

    cat = lambda x: jnp.concatenate([x[e] for e in range(E)], axis=1)
    ew1 = pad_in(cat(p["ew1"]))                # (Dp, E*H)
    eb1 = cat(p["eb1"])                        # (1, E*H)
    ew2 = _block_diag([p["ew2"][e] for e in range(E)])   # (E*H, E*H)
    eb2 = cat(p["eb2"])
    ew3 = _block_diag([p["ew3"][e] for e in range(E)])
    eb3 = cat(p["eb3"])
    ewo = _block_diag([p["ewo"][e] for e in range(E)])   # (E*H, E*S)
    ebo = cat(p["ebo"])                        # (1, E*S)

    return dict(wtm=wtm, wtt=wtt, bt=bt,
                gw1=gw1, gb1=p["gb1"], gwo=p["gwo"], gbo=p["gbo"],
                ew1=ew1, eb1=eb1, ew2=ew2, eb2=eb2, ew3=ew3, eb3=eb3,
                ewo=ewo, ebo=ebo)


# ----------------------------- wrapper --------------------------------------

def surenet_forward(mutation_counts, trait_vectors, fused, *,
                    num_experts, num_signatures):
    # Whole problem fits trivially in VMEM -> single gridless invocation with
    # whole-array VMEM specs (no pipelining / double-buffering overhead).
    # TODO(synk): if the production batch grows large, tile the batch over a
    # ("parallel",) grid (TB multiple of 8, weights on constant index_maps) so
    # v7x's second TensorCore gets work; at B=8 gridless is fastest.
    B = mutation_counts.shape[0]
    operands = (mutation_counts, trait_vectors,
                fused["wtm"], fused["wtt"], fused["bt"],
                fused["gw1"], fused["gb1"], fused["gwo"], fused["gbo"],
                fused["ew1"], fused["eb1"], fused["ew2"], fused["eb2"],
                fused["ew3"], fused["eb3"], fused["ewo"], fused["ebo"])
    vmem = pl.BlockSpec(memory_space=pltpu.MemorySpace.VMEM)
    kernel = functools.partial(surenet_kernel,
                               num_experts=num_experts,
                               num_signatures=num_signatures)
    return pl.pallas_call(
        kernel,
        out_shape=jax.ShapeDtypeStruct((B, num_signatures), jnp.float32),
        in_specs=[vmem] * len(operands),
        out_specs=vmem,
    )(*operands)


# ------------------------ deterministic params -------------------------------

def _init_linear(key, fan_in, fan_out):
    # PyTorch nn.Linear default init, stored transposed as (in, out).
    k1, k2 = jax.random.split(key)
    bound = 1.0 / float(fan_in) ** 0.5
    w = jax.random.uniform(k1, (fan_in, fan_out), jnp.float32, -bound, bound)
    b = jax.random.uniform(k2, (1, fan_out), jnp.float32, -bound, bound)
    return w, b


def make_params(key, num_signatures, num_traits, num_experts, hidden_units):
    D = 96 + num_traits
    keys = jax.random.split(key, 4 + 4 * num_experts)
    wt, bt = _init_linear(keys[0], D, D)
    gw1, gb1 = _init_linear(keys[1], D, hidden_units)
    gwo, gbo = _init_linear(keys[2], hidden_units, num_experts)

    ew1, eb1, ew2, eb2, ew3, eb3, ewo, ebo = [], [], [], [], [], [], [], []
    for e in range(num_experts):
        ks = jax.random.split(keys[4 + e], 4)
        w, b = _init_linear(ks[0], D, hidden_units); ew1.append(w); eb1.append(b)
        w, b = _init_linear(ks[1], hidden_units, hidden_units); ew2.append(w); eb2.append(b)
        w, b = _init_linear(ks[2], hidden_units, hidden_units); ew3.append(w); eb3.append(b)
        w, b = _init_linear(ks[3], hidden_units, num_signatures); ewo.append(w); ebo.append(b)

    stack = lambda xs: jnp.stack(xs, axis=0)
    return dict(wt=wt, bt=bt, gw1=gw1, gb1=gb1, gwo=gwo, gbo=gbo,
                ew1=stack(ew1), eb1=stack(eb1), ew2=stack(ew2), eb2=stack(eb2),
                ew3=stack(ew3), eb3=stack(eb3), ewo=stack(ewo), ebo=stack(ebo))


# ------------------------- pure-JAX reference ---------------------------------

def surenet_reference(mutation_counts, trait_vectors, p):
    sm = lambda z: jax.nn.softmax(z, axis=-1)
    relu = jax.nn.relu
    x = jnp.concatenate([mutation_counts, trait_vectors], axis=1)
    h = relu(x @ p["wt"] + p["bt"])
    gate = sm(relu(h @ p["gw1"] + p["gb1"]) @ p["gwo"] + p["gbo"])
    outs = []
    for e in range(p["ew1"].shape[0]):
        a = relu(h @ p["ew1"][e] + p["eb1"][e])
        a = relu(a @ p["ew2"][e] + p["eb2"][e])
        a = relu(a @ p["ew3"][e] + p["eb3"][e])
        outs.append(sm(a @ p["ewo"][e] + p["ebo"][e]))
    stacked = jnp.stack(outs, axis=1)                       # (B, E, S)
    return jnp.sum(stacked * gate[:, :, None], axis=1)      # (B, S)


# --------------------------------- main ---------------------------------------

if __name__ == "__main__":
    num_signatures = 8
    num_traits = 8
    num_experts = 4
    hidden_units = 32
    batch = 8

    key = jax.random.PRNGKey(0)
    k_params, k_mut, k_trait = jax.random.split(key, 3)
    params = make_params(k_params, num_signatures, num_traits,
                         num_experts, hidden_units)
    fused = fuse_params(params, num_mut_categories=96)

    mutation_counts = jax.random.poisson(
        k_mut, 3.0, (batch, 96)).astype(jnp.float32)
    trait_idx = jax.random.randint(k_trait, (batch,), 0, num_traits)
    trait_vectors = jax.nn.one_hot(trait_idx, num_traits, dtype=jnp.float32)

    out = surenet_forward(mutation_counts, trait_vectors, fused,
                          num_experts=num_experts,
                          num_signatures=num_signatures)
    out = jax.block_until_ready(out)

    ref = surenet_reference(mutation_counts, trait_vectors, params)
    assert out.shape == (batch, num_signatures)
    assert jnp.allclose(out, ref, atol=1e-5, rtol=1e-5), "mismatch vs reference"
    # rows of the final prediction are convex combos of softmaxes -> sum to 1
    assert jnp.allclose(jnp.sum(out, axis=1), 1.0, atol=1e-5)

    print("KERNEL_OK")
</pallas_src>

<mosaic_0001>
module attributes {stable_mosaic.version = 11 : i64} {
  func.func @surenet_kernel(%arg0: memref<8x96xf32, #tpu.memory_space<vmem>>, %arg1: memref<8x8xf32, #tpu.memory_space<vmem>>, %arg2: memref<96x128xf32, #tpu.memory_space<vmem>>, %arg3: memref<8x128xf32, #tpu.memory_space<vmem>>, %arg4: memref<1x128xf32, #tpu.memory_space<vmem>>, %arg5: memref<128x32xf32, #tpu.memory_space<vmem>>, %arg6: memref<1x32xf32, #tpu.memory_space<vmem>>, %arg7: memref<32x4xf32, #tpu.memory_space<vmem>>, %arg8: memref<1x4xf32, #tpu.memory_space<vmem>>, %arg9: memref<128x128xf32, #tpu.memory_space<vmem>>, %arg10: memref<1x128xf32, #tpu.memory_space<vmem>>, %arg11: memref<128x128xf32, #tpu.memory_space<vmem>>, %arg12: memref<1x128xf32, #tpu.memory_space<vmem>>, %arg13: memref<128x128xf32, #tpu.memory_space<vmem>>, %arg14: memref<1x128xf32, #tpu.memory_space<vmem>>, %arg15: memref<128x32xf32, #tpu.memory_space<vmem>>, %arg16: memref<1x32xf32, #tpu.memory_space<vmem>>, %arg17: memref<8x8xf32, #tpu.memory_space<vmem>>) attributes {dimension_semantics = [], scalar_prefetch = 0 : i64, scratch_operands = 0 : i64, tpu.core_type = #tpu.core_type<tc>} {
    %c0 = arith.constant 0 : index
    %c0_0 = arith.constant 0 : index
    %0 = vector.load %arg0[%c0, %c0_0] : memref<8x96xf32, #tpu.memory_space<vmem>>, vector<8x96xf32>
    %c0_1 = arith.constant 0 : index
    %c0_2 = arith.constant 0 : index
    %1 = vector.load %arg2[%c0_1, %c0_2] : memref<96x128xf32, #tpu.memory_space<vmem>>, vector<96x128xf32>
    %cst = arith.constant dense<0.000000e+00> : vector<8x128xf32>
    %2 = tpu.matmul %0, %1, %cst {dimension_numbers = #tpu.dot_dimension_numbers<[1], [0], [0], [1], [0, 0, 1, 1], [], []>} : vector<8x96xf32>, vector<96x128xf32>, vector<8x128xf32> -> vector<8x128xf32>
    %c0_3 = arith.constant 0 : index
    %c0_4 = arith.constant 0 : index
    %3 = vector.load %arg1[%c0_3, %c0_4] : memref<8x8xf32, #tpu.memory_space<vmem>>, vector<8x8xf32>
    %c0_5 = arith.constant 0 : index
    %c0_6 = arith.constant 0 : index
    %4 = vector.load %arg3[%c0_5, %c0_6] : memref<8x128xf32, #tpu.memory_space<vmem>>, vector<8x128xf32>
    %cst_7 = arith.constant dense<0.000000e+00> : vector<8x128xf32>
    %5 = tpu.matmul %3, %4, %cst_7 {dimension_numbers = #tpu.dot_dimension_numbers<[1], [0], [0], [1], [0, 0, 1, 1], [], []>} : vector<8x8xf32>, vector<8x128xf32>, vector<8x128xf32> -> vector<8x128xf32>
    %6 = arith.addf %2, %5 : vector<8x128xf32>
    %c0_8 = arith.constant 0 : index
    %c0_9 = arith.constant 0 : index
    %7 = vector.load %arg4[%c0_8, %c0_9] : memref<1x128xf32, #tpu.memory_space<vmem>>, vector<1x128xf32>
    %8 = vector.broadcast %7 : vector<1x128xf32> to vector<8x128xf32>
    %9 = arith.addf %6, %8 : vector<8x128xf32>
    %cst_10 = arith.constant 0.000000e+00 : f32
    %10 = vector.broadcast %cst_10 : f32 to vector<8x128xf32>
    %11 = arith.maximumf %9, %10 : vector<8x128xf32>
    %c0_11 = arith.constant 0 : index
    %c0_12 = arith.constant 0 : index
    %12 = vector.load %arg5[%c0_11, %c0_12] : memref<128x32xf32, #tpu.memory_space<vmem>>, vector<128x32xf32>
    %cst_13 = arith.constant dense<0.000000e+00> : vector<8x32xf32>
    %13 = tpu.matmul %11, %12, %cst_13 {dimension_numbers = #tpu.dot_dimension_numbers<[1], [0], [0], [1], [0, 0, 1, 1], [], []>} : vector<8x128xf32>, vector<128x32xf32>, vector<8x32xf32> -> vector<8x32xf32>
    %c0_14 = arith.constant 0 : index
    %c0_15 = arith.constant 0 : index
    %14 = vector.load %arg6[%c0_14, %c0_15] : memref<1x32xf32, #tpu.memory_space<vmem>>, vector<1x32xf32>
    %15 = vector.broadcast %14 : vector<1x32xf32> to vector<8x32xf32>
    %16 = arith.addf %13, %15 : vector<8x32xf32>
    %cst_16 = arith.constant 0.000000e+00 : f32
    %17 = vector.broadcast %cst_16 : f32 to vector<8x32xf32>
    %18 = arith.maximumf %16, %17 : vector<8x32xf32>
    %c0_17 = arith.constant 0 : index
    %c0_18 = arith.constant 0 : index
    %19 = vector.load %arg7[%c0_17, %c0_18] : memref<32x4xf32, #tpu.memory_space<vmem>>, vector<32x4xf32>
    %cst_19 = arith.constant dense<0.000000e+00> : vector<8x4xf32>
    %20 = tpu.matmul %18, %19, %cst_19 {dimension_numbers = #tpu.dot_dimension_numbers<[1], [0], [0], [1], [0, 0, 1, 1], [], []>} : vector<8x32xf32>, vector<32x4xf32>, vector<8x4xf32> -> vector<8x4xf32>
    %c0_20 = arith.constant 0 : index
    %c0_21 = arith.constant 0 : index
    %21 = vector.load %arg8[%c0_20, %c0_21] : memref<1x4xf32, #tpu.memory_space<vmem>>, vector<1x4xf32>
    %22 = vector.broadcast %21 : vector<1x4xf32> to vector<8x4xf32>
    %23 = arith.addf %20, %22 : vector<8x4xf32>
    %cst_22 = arith.constant dense<0xFF800000> : vector<8xf32>
    %24 = vector.multi_reduction <maximumf>, %23, %cst_22 [1] : vector<8x4xf32> to vector<8xf32>
    %25 = vector.shape_cast %24 : vector<8xf32> to vector<8x1xf32>
    %26 = vector.broadcast %25 : vector<8x1xf32> to vector<8x4xf32>
    %27 = arith.subf %23, %26 : vector<8x4xf32>
    %28 = math.exp %27 : vector<8x4xf32>
    %cst_23 = arith.constant dense<0.000000e+00> : vector<8xf32>
    %29 = vector.multi_reduction <add>, %28, %cst_23 [1] : vector<8x4xf32> to vector<8xf32>
    %30 = vector.shape_cast %29 : vector<8xf32> to vector<8x1xf32>
    %31 = tpu.reciprocal %30 {approx = true} : vector<8x1xf32> -> vector<8x1xf32>
    %32 = arith.mulf %30, %31 : vector<8x1xf32>
    %cst_24 = arith.constant 2.000000e+00 : f32
    %33 = vector.broadcast %cst_24 : f32 to vector<8x1xf32>
    %34 = arith.subf %33, %32 : vector<8x1xf32>
    %35 = arith.mulf %31, %34 : vector<8x1xf32>
    %36 = vector.broadcast %35 : vector<8x1xf32> to vector<8x4xf32>
    %37 = arith.mulf %28, %36 : vector<8x4xf32>
    %c0_25 = arith.constant 0 : index
    %c0_26 = arith.constant 0 : index
    %38 = vector.load %arg9[%c0_25, %c0_26] : memref<128x128xf32, #tpu.memory_space<vmem>>, vector<128x128xf32>
    %cst_27 = arith.constant dense<0.000000e+00> : vector<8x128xf32>
    %39 = tpu.matmul %11, %38, %cst_27 {dimension_numbers = #tpu.dot_dimension_numbers<[1], [0], [0], [1], [0, 0, 1, 1], [], []>} : vector<8x128xf32>, vector<128x128xf32>, vector<8x128xf32> -> vector<8x128xf32>
    %c0_28 = arith.constant 0 : index
    %c0_29 = arith.constant 0 : index
    %40 = vector.load %arg10[%c0_28, %c0_29] : memref<1x128xf32, #tpu.memory_space<vmem>>, vector<1x128xf32>
    %41 = vector.broadcast %40 : vector<1x128xf32> to vector<8x128xf32>
    %42 = arith.addf %39, %41 : vector<8x128xf32>
    %cst_30 = arith.constant 0.000000e+00 : f32
    %43 = vector.broadcast %cst_30 : f32 to vector<8x128xf32>
    %44 = arith.maximumf %42, %43 : vector<8x128xf32>
    %c0_31 = arith.constant 0 : index
    %c0_32 = arith.constant 0 : index
    %45 = vector.load %arg11[%c0_31, %c0_32] : memref<128x128xf32, #tpu.memory_space<vmem>>, vector<128x128xf32>
    %cst_33 = arith.constant dense<0.000000e+00> : vector<8x128xf32>
    %46 = tpu.matmul %44, %45, %cst_33 {dimension_numbers = #tpu.dot_dimension_numbers<[1], [0], [0], [1], [0, 0, 1, 1], [], []>} : vector<8x128xf32>, vector<128x128xf32>, vector<8x128xf32> -> vector<8x128xf32>
    %c0_34 = arith.constant 0 : index
    %c0_35 = arith.constant 0 : index
    %47 = vector.load %arg12[%c0_34, %c0_35] : memref<1x128xf32, #tpu.memory_space<vmem>>, vector<1x128xf32>
    %48 = vector.broadcast %47 : vector<1x128xf32> to vector<8x128xf32>
    %49 = arith.addf %46, %48 : vector<8x128xf32>
    %cst_36 = arith.constant 0.000000e+00 : f32
    %50 = vector.broadcast %cst_36 : f32 to vector<8x128xf32>
    %51 = arith.maximumf %49, %50 : vector<8x128xf32>
    %c0_37 = arith.constant 0 : index
    %c0_38 = arith.constant 0 : index
    %52 = vector.load %arg13[%c0_37, %c0_38] : memref<128x128xf32, #tpu.memory_space<vmem>>, vector<128x128xf32>
    %cst_39 = arith.constant dense<0.000000e+00> : vector<8x128xf32>
    %53 = tpu.matmul %51, %52, %cst_39 {dimension_numbers = #tpu.dot_dimension_numbers<[1], [0], [0], [1], [0, 0, 1, 1], [], []>} : vector<8x128xf32>, vector<128x128xf32>, vector<8x128xf32> -> vector<8x128xf32>
    %c0_40 = arith.constant 0 : index
    %c0_41 = arith.constant 0 : index
    %54 = vector.load %arg14[%c0_40, %c0_41] : memref<1x128xf32, #tpu.memory_space<vmem>>, vector<1x128xf32>
    %55 = vector.broadcast %54 : vector<1x128xf32> to vector<8x128xf32>
    %56 = arith.addf %53, %55 : vector<8x128xf32>
    %cst_42 = arith.constant 0.000000e+00 : f32
    %57 = vector.broadcast %cst_42 : f32 to vector<8x128xf32>
    %58 = arith.maximumf %56, %57 : vector<8x128xf32>
    %c0_43 = arith.constant 0 : index
    %c0_44 = arith.constant 0 : index
    %59 = vector.load %arg15[%c0_43, %c0_44] : memref<128x32xf32, #tpu.memory_space<vmem>>, vector<128x32xf32>
    %cst_45 = arith.constant dense<0.000000e+00> : vector<8x32xf32>
    %60 = tpu.matmul %58, %59, %cst_45 {dimension_numbers = #tpu.dot_dimension_numbers<[1], [0], [0], [1], [0, 0, 1, 1], [], []>} : vector<8x128xf32>, vector<128x32xf32>, vector<8x32xf32> -> vector<8x32xf32>
    %c0_46 = arith.constant 0 : index
    %c0_47 = arith.constant 0 : index
    %61 = vector.load %arg16[%c0_46, %c0_47] : memref<1x32xf32, #tpu.memory_space<vmem>>, vector<1x32xf32>
    %62 = vector.broadcast %61 : vector<1x32xf32> to vector<8x32xf32>
    %63 = arith.addf %60, %62 : vector<8x32xf32>
    %cst_48 = arith.constant 0.000000e+00 : f32
    %64 = vector.broadcast %cst_48 : f32 to vector<8x8xf32>
    %65 = vector.extract_strided_slice %63 {offsets = [0, 0], sizes = [8, 8], strides = [1, 1]} : vector<8x32xf32> to vector<8x8xf32>
    %cst_49 = arith.constant dense<0xFF800000> : vector<8xf32>
    %66 = vector.multi_reduction <maximumf>, %65, %cst_49 [1] : vector<8x8xf32> to vector<8xf32>
    %67 = vector.shape_cast %66 : vector<8xf32> to vector<8x1xf32>
    %68 = vector.broadcast %67 : vector<8x1xf32> to vector<8x8xf32>
    %69 = arith.subf %65, %68 : vector<8x8xf32>
    %70 = math.exp %69 : vector<8x8xf32>
    %cst_50 = arith.constant dense<0.000000e+00> : vector<8xf32>
    %71 = vector.multi_reduction <add>, %70, %cst_50 [1] : vector<8x8xf32> to vector<8xf32>
    %72 = vector.shape_cast %71 : vector<8xf32> to vector<8x1xf32>
    %73 = tpu.reciprocal %72 {approx = true} : vector<8x1xf32> -> vector<8x1xf32>
    %74 = arith.mulf %72, %73 : vector<8x1xf32>
    %cst_51 = arith.constant 2.000000e+00 : f32
    %75 = vector.broadcast %cst_51 : f32 to vector<8x1xf32>
    %76 = arith.subf %75, %74 : vector<8x1xf32>
    %77 = arith.mulf %73, %76 : vector<8x1xf32>
    %78 = vector.broadcast %77 : vector<8x1xf32> to vector<8x8xf32>
    %79 = arith.mulf %70, %78 : vector<8x8xf32>
    %80 = vector.extract_strided_slice %37 {offsets = [0, 0], sizes = [8, 1], strides = [1, 1]} : vector<8x4xf32> to vector<8x1xf32>
    %81 = vector.broadcast %80 : vector<8x1xf32> to vector<8x8xf32>
    %82 = arith.mulf %81, %79 : vector<8x8xf32>
    %83 = arith.addf %64, %82 : vector<8x8xf32>
    %84 = vector.extract_strided_slice %63 {offsets = [0, 8], sizes = [8, 8], strides = [1, 1]} : vector<8x32xf32> to vector<8x8xf32>
    %cst_52 = arith.constant dense<0xFF800000> : vector<8xf32>
    %85 = vector.multi_reduction <maximumf>, %84, %cst_52 [1] : vector<8x8xf32> to vector<8xf32>
    %86 = vector.shape_cast %85 : vector<8xf32> to vector<8x1xf32>
    %87 = vector.broadcast %86 : vector<8x1xf32> to vector<8x8xf32>
    %88 = arith.subf %84, %87 : vector<8x8xf32>
    %89 = math.exp %88 : vector<8x8xf32>
    %cst_53 = arith.constant dense<0.000000e+00> : vector<8xf32>
    %90 = vector.multi_reduction <add>, %89, %cst_53 [1] : vector<8x8xf32> to vector<8xf32>
    %91 = vector.shape_cast %90 : vector<8xf32> to vector<8x1xf32>
    %92 = tpu.reciprocal %91 {approx = true} : vector<8x1xf32> -> vector<8x1xf32>
    %93 = arith.mulf %91, %92 : vector<8x1xf32>
    %cst_54 = arith.constant 2.000000e+00 : f32
    %94 = vector.broadcast %cst_54 : f32 to vector<8x1xf32>
    %95 = arith.subf %94, %93 : vector<8x1xf32>
    %96 = arith.mulf %92, %95 : vector<8x1xf32>
    %97 = vector.broadcast %96 : vector<8x1xf32> to vector<8x8xf32>
    %98 = arith.mulf %89, %97 : vector<8x8xf32>
    %99 = vector.extract_strided_slice %37 {offsets = [0, 1], sizes = [8, 1], strides = [1, 1]} : vector<8x4xf32> to vector<8x1xf32>
    %100 = vector.broadcast %99 : vector<8x1xf32> to vector<8x8xf32>
    %101 = arith.mulf %100, %98 : vector<8x8xf32>
    %102 = arith.addf %83, %101 : vector<8x8xf32>
    %103 = vector.extract_strided_slice %63 {offsets = [0, 16], sizes = [8, 8], strides = [1, 1]} : vector<8x32xf32> to vector<8x8xf32>
    %cst_55 = arith.constant dense<0xFF800000> : vector<8xf32>
    %104 = vector.multi_reduction <maximumf>, %103, %cst_55 [1] : vector<8x8xf32> to vector<8xf32>
    %105 = vector.shape_cast %104 : vector<8xf32> to vector<8x1xf32>
    %106 = vector.broadcast %105 : vector<8x1xf32> to vector<8x8xf32>
    %107 = arith.subf %103, %106 : vector<8x8xf32>
    %108 = math.exp %107 : vector<8x8xf32>
    %cst_56 = arith.constant dense<0.000000e+00> : vector<8xf32>
    %109 = vector.multi_reduction <add>, %108, %cst_56 [1] : vector<8x8xf32> to vector<8xf32>
    %110 = vector.shape_cast %109 : vector<8xf32> to vector<8x1xf32>
    %111 = tpu.reciprocal %110 {approx = true} : vector<8x1xf32> -> vector<8x1xf32>
    %112 = arith.mulf %110, %111 : vector<8x1xf32>
    %cst_57 = arith.constant 2.000000e+00 : f32
    %113 = vector.broadcast %cst_57 : f32 to vector<8x1xf32>
    %114 = arith.subf %113, %112 : vector<8x1xf32>
    %115 = arith.mulf %111, %114 : vector<8x1xf32>
    %116 = vector.broadcast %115 : vector<8x1xf32> to vector<8x8xf32>
    %117 = arith.mulf %108, %116 : vector<8x8xf32>
    %118 = vector.extract_strided_slice %37 {offsets = [0, 2], sizes = [8, 1], strides = [1, 1]} : vector<8x4xf32> to vector<8x1xf32>
    %119 = vector.broadcast %118 : vector<8x1xf32> to vector<8x8xf32>
    %120 = arith.mulf %119, %117 : vector<8x8xf32>
    %121 = arith.addf %102, %120 : vector<8x8xf32>
    %122 = vector.extract_strided_slice %63 {offsets = [0, 24], sizes = [8, 8], strides = [1, 1]} : vector<8x32xf32> to vector<8x8xf32>
    %cst_58 = arith.constant dense<0xFF800000> : vector<8xf32>
    %123 = vector.multi_reduction <maximumf>, %122, %cst_58 [1] : vector<8x8xf32> to vector<8xf32>
    %124 = vector.shape_cast %123 : vector<8xf32> to vector<8x1xf32>
    %125 = vector.broadcast %124 : vector<8x1xf32> to vector<8x8xf32>
    %126 = arith.subf %122, %125 : vector<8x8xf32>
    %127 = math.exp %126 : vector<8x8xf32>
    %cst_59 = arith.constant dense<0.000000e+00> : vector<8xf32>
    %128 = vector.multi_reduction <add>, %127, %cst_59 [1] : vector<8x8xf32> to vector<8xf32>
    %129 = vector.shape_cast %128 : vector<8xf32> to vector<8x1xf32>
    %130 = tpu.reciprocal %129 {approx = true} : vector<8x1xf32> -> vector<8x1xf32>
    %131 = arith.mulf %129, %130 : vector<8x1xf32>
    %cst_60 = arith.constant 2.000000e+00 : f32
    %132 = vector.broadcast %cst_60 : f32 to vector<8x1xf32>
    %133 = arith.subf %132, %131 : vector<8x1xf32>
    %134 = arith.mulf %130, %133 : vector<8x1xf32>
    %135 = vector.broadcast %134 : vector<8x1xf32> to vector<8x8xf32>
    %136 = arith.mulf %127, %135 : vector<8x8xf32>
    %137 = vector.extract_strided_slice %37 {offsets = [0, 3], sizes = [8, 1], strides = [1, 1]} : vector<8x4xf32> to vector<8x1xf32>
    %138 = vector.broadcast %137 : vector<8x1xf32> to vector<8x8xf32>
    %139 = arith.mulf %138, %136 : vector<8x8xf32>
    %140 = arith.addf %121, %139 : vector<8x8xf32>
    %c0_61 = arith.constant 0 : index
    %c0_62 = arith.constant 0 : index
    %141 = vector.load %arg17[%c0_61, %c0_62] : memref<8x8xf32, #tpu.memory_space<vmem>>, vector<8x8xf32>
    tpu.vector_store %arg17[%c0_61, %c0_62], %140 {strides = array<i32>} : memref<8x8xf32, #tpu.memory_space<vmem>>, vector<8x8xf32>,
    return
  }
}

</mosaic_0001>

<bundles_post_ra>
// kernel: tpu_custom_call.1
= control target key start
LH: loop header
LB: loop body
LE: loop exit
PB: predicated region body
PF: predicated region fallthrough
CT: control target
= control target key end

     0   :  { %s1021_s0 = inlined_call_operand.vmem [shape: f32[8,96], index: 0, kind: input, shape index: {}]   ;;  %s1022_s1 = inlined_call_operand.vmem [shape: f32[8,8], index: 1, kind: input, shape index: {}]   ;;  %s1023_s2 = inlined_call_operand.hbm [shape: f32[96,128], index: 2, kind: input, shape index: {}]   ;;  %s1024_s3 = inlined_call_operand.vmem [shape: f32[8,128], index: 3, kind: input, shape index: {}]   ;;  %s1025_s4 = inlined_call_operand.vmem [shape: f32[1,128], index: 4, kind: input, shape index: {}]   ;;  %s1026_s5 = inlined_call_operand.vmem [shape: f32[128,32], index: 5, kind: input, shape index: {}]   ;;  %s1027_s6 = inlined_call_operand.vmem [shape: f32[1,32], index: 6, kind: input, shape index: {}]   ;;  %s1028_s7 = inlined_call_operand.vmem [shape: f32[32,4], index: 7, kind: input, shape index: {}]   ;;  %s1029_s8 = inlined_call_operand.vmem [shape: f32[1,4], index: 8, kind: input, shape index: {}]   ;;  %s1030_s9 = inlined_call_operand.vmem [shape: f32[128,128], index: 9, kind: input, shape index: {}]   ;;  %s1031_s10 = inlined_call_operand.vmem [shape: f32[1,128], index: 10, kind: input, shape index: {}]   ;;  %s1032_s11 = inlined_call_operand.vmem [shape: f32[128,128], index: 11, kind: input, shape index: {}]   ;;  %s1033_s12 = inlined_call_operand.vmem [shape: f32[1,128], index: 12, kind: input, shape index: {}]   ;;  %s1034_s13 = inlined_call_operand.hbm [shape: f32[128,128], index: 13, kind: input, shape index: {}]   ;;  %s1035_s14 = inlined_call_operand.vmem [shape: f32[1,128], index: 14, kind: input, shape index: {}]   ;;  %s1036_s15 = inlined_call_operand.vmem [shape: f32[128,32], index: 15, kind: input, shape index: {}]   ;;  %s1037_s16 = inlined_call_operand.vmem [shape: f32[1,32], index: 16, kind: input, shape index: {}]   ;;  %s1038_s17 = inlined_call_operand.hbm [shape: f32[8,8], index: 17, kind: output, shape index: {}]  }
   0x1   :  { %1039 = sst [smem:[#allocation11_spill]] %s1021_s0 }
   0x2   :  { %1040 = sst [smem:[#allocation12_spill]] %s1022_s1 }
   0x3   :  { %22 = vsyncpa [#allocation3], 0 }
   0x4   :  { %23 = vsyncpa [#allocation6], 0 }
   0x5   :  { %24 = vsyncpa [#allocation4], 0  ;;  %s33_s26 = sshll.u32 %s1023_s2, 4  ;;  %s661_s27 = smov [#allocation2]   ;;  %s34_s26 = int_to_ptr.hbm [resolvable:$true] %s33_s26 }
   0x6   :  { %s35_s28 = sshll.u32 %s661_s27, 4  ;;  %s66_s30 = sshll.u32 %s1034_s13, 4  ;;  %s36_s28 = int_to_ptr.vmem [resolvable:$true] %s35_s28  ;;  %s67_s30 = int_to_ptr.hbm [resolvable:$true] %s66_s30 }
   0x7   :  { %s662_s18 = smov 128   ;;  %s663_s19 = smov 8  }
   0x8   :  { %41 = dma.hbm_to_vmem [thread:$0]  %s34_s26, 1536, %s36_s28, [#allocation3], %s662_s18, %s662_s18, %s663_s19  }
   0x9   :  { %s664_s1 = smov [#allocation5]  }
   0xa   :  { %s68_s20 = sshll.u32 %s664_s1, 4  ;;  %s69_s20 = int_to_ptr.vmem [resolvable:$true] %s68_s20 }
   0xb   :  { %74 = dma.hbm_to_vmem [thread:$0]  %s67_s30, 2048, %s69_s20, [#allocation6], %s662_s18, %s662_s18, %s663_s19  }
   0xc   :  { %655 = dma.done.wait [#allocation3], 1536  }
   0xd   :  { %656 = vsyncadd [#allocation3], 4294965760 }
   0xe   :  { %657 = dma.done.wait [#allocation6], 2048  }
   0xf   :  { %658 = vsyncadd [#allocation6], 4294965248  ;;  %v101_v0 = vld [vmem:[#allocation2 + $0x58] sm:$0xff]  ;;  %v100_v1 = vld [vmem:[#allocation2 + $0x50] sm:$0xff]  ;;  %vm104_vm0 = vcmask 64512   ;;  %s1041_s23 = sld [smem:[#allocation12_spill]] }
  0x10   :  { %136 = vmatpush.msra.mxu1 %v101_v0  ;;  %v99_v2 = vld [vmem:[#allocation2 + $0x48] sm:$0xff]  ;;  %v103_v3 = vld [vmem:[%s1024_s3] sm:$0xff]  ;;  %v173_v6 = vld [vmem:[%s1026_s5 + $0x78] sm:$0xff]  ;;  %s1042_s26 = sld [smem:[#allocation11_spill]]  ;;  %vm128_vm1 = vcmask 785408   ;;  %vm207_vm2 = vcmask 261120  }
  0x11   :  { %v98_v4 = vld [vmem:[#allocation2 + $0x40] sm:$0xff]  ;;  %123 = vmatpush.msra.mxu0 %v103_v3  ;;  %v261_v7 = vld [vmem:[%s1030_s9 + $0x78] sm:$0xff]  ;;  %v172_v8 = vld [vmem:[%s1026_s5 + $0x70] sm:$0xff]  ;;  %178 = vmatpush.msra.mxu2 %v173_v6  ;;  %vm231_vm3 = vcmask 31744   ;;  %vm459_vm4 = vcmask 195712   ;;  %vm430_vm5 = vcmask 130112  }
  0x12   :  { %137 = vmatpush.msra.mxu1 %v100_v1  ;;  %v97_v9 = vld [vmem:[#allocation2 + $0x38] sm:$0xff]  ;;  %v260_v10 = vld [vmem:[%s1030_s9 + $0x70] sm:$0xff]  ;;  %v171_v11 = vld [vmem:[%s1026_s5 + $0x68] sm:$0xff]  ;;  %vm488_vm6 = vcmask 261312   ;;  %s671_s28 = smov 104   ;;  %s672_s29 = smov [#allocation7]  }
  0x13   :  { %266 = vmatpush.msrb.mxu0 %v261_v7  ;;  %v259_v12 = vld [vmem:[%s1030_s9 + $0x68] sm:$0xff]  ;;  %v96_v13 = vld [vmem:[#allocation2 + $0x30] sm:$0xff]  ;;  %179 = vmatpush.msra.mxu2 %v172_v8  ;;  %v170_v14 = vld [vmem:[%s1026_s5 + $0x60] sm:$0xff]  ;;  %s525_s30 = sshll.u32 %s1038_s17, 4  ;;  %s526_s30 = int_to_ptr.hbm [resolvable:$true] %s525_s30 }
  0x14   :  { %138 = vmatpush.msra.mxu1 %v99_v2  ;;  %v258_v15 = vld [vmem:[%s1030_s9 + $0x60] sm:$0xff]  ;;  %v95_v16 = vld [vmem:[#allocation2 + $0x28] sm:$0xff]  ;;  %v169_v18 = vld [vmem:[%s1026_s5 + $0x58] sm:$0xff] }
  0x15   :  { %v102_v5 = vld [vmem:[%s1041_s23] sm:$0xff]  ;;  %267 = vmatpush.msrb.mxu0 %v260_v10  ;;  %180 = vmatpush.msra.mxu2 %v171_v11  ;;  %v257_v19 = vld [vmem:[%s1030_s9 + $0x58] sm:$0xff]  ;;  %v168_v21 = vld [vmem:[%s1026_s5 + $0x50] sm:$0xff] }
  0x16   :  { %536 = vmatmul.msk.f32.vlgmr.msra.gmra.mxu0 %vm104_vm0, %v102_v5  ;;  %139 = vmatpush.msra.mxu1 %v98_v4  ;;  %v94_v17 = vld [vmem:[#allocation2 + $0x20] sm:$0xff]  ;;  %v93_v20 = vld [vmem:[#allocation2 + $0x18] sm:$0xff]  ;;  %v256_v22 = vld [vmem:[%s1030_s9 + $0x50] sm:$0xff] }
  0x17   :  { %268 = vmatpush.msrb.mxu0 %v259_v12  ;;  %181 = vmatpush.msra.mxu2 %v170_v14  ;;  %v167_v23 = vld [vmem:[%s1026_s5 + $0x48] sm:$0xff]  ;;  %v92_v25 = vld [vmem:[#allocation2 + $0x10] sm:$0xff]  ;;  %v166_v26 = vld [vmem:[%s1026_s5 + $0x40] sm:$0xff] }
  0x18   :  { %140 = vmatpush.msra.mxu1 %v97_v9  ;;  %v255_v24 = vld [vmem:[%s1030_s9 + $0x48] sm:$0xff]  ;;  %v254_v27 = vld [vmem:[%s1030_s9 + $0x40] sm:$0xff]  ;;  %v165_v29 = vld [vmem:[%s1026_s5 + $0x38] sm:$0xff] }
  0x19   :  { %269 = vmatpush.msrb.mxu0 %v258_v15  ;;  %182 = vmatpush.msra.mxu2 %v169_v18  ;;  %v91_v28 = vld [vmem:[#allocation2 + $0x8] sm:$0xff]  ;;  %v253_v30 = vld [vmem:[%s1030_s9 + $0x38] sm:$0xff]  ;;  %v90_v31 = vld [vmem:[#allocation2] sm:$0xff] }
  0x1a   :  { %141 = vmatpush.msra.mxu1 %v96_v13  ;;  %v89_v32 = vld [vmem:[%s1042_s26] sm:$0xff]  ;;  %v164_v33 = vld [vmem:[%s1026_s5 + $0x30] sm:$0xff]  ;;  %v163_v35 = vld [vmem:[%s1026_s5 + $0x28] sm:$0xff] }
  0x1b   :  { %270 = vmatpush.msrb.mxu0 %v257_v19  ;;  %183 = vmatpush.msra.mxu2 %v168_v21  ;;  %v252_v34 = vld [vmem:[%s1030_s9 + $0x30] sm:$0xff]  ;;  %v251_v36 = vld [vmem:[%s1030_s9 + $0x28] sm:$0xff]  ;;  %v162_v37 = vld [vmem:[%s1026_s5 + $0x20] sm:$0xff] }
  0x1c   :  { %142 = vmatpush.msra.mxu1 %v95_v16  ;;  %v250_v38 = vld [vmem:[%s1030_s9 + $0x20] sm:$0xff]  ;;  %v161_v39 = vld [vmem:[%s1026_s5 + $0x18] sm:$0xff]  ;;  %v160_v41 = vld [vmem:[%s1026_s5 + $0x10] sm:$0xff] }
  0x1d   :  { %271 = vmatpush.msrb.mxu0 %v256_v22  ;;  %184 = vmatpush.msra.mxu2 %v167_v23  ;;  %v249_v40 = vld [vmem:[%s1030_s9 + $0x18] sm:$0xff]  ;;  %v248_v42 = vld [vmem:[%s1030_s9 + $0x10] sm:$0xff]  ;;  %v159_v43 = vld [vmem:[%s1026_s5 + $0x8] sm:$0xff] }
  0x1e   :  { %143 = vmatpush.msra.mxu1 %v94_v17  ;;  %v247_v44 = vld [vmem:[%s1030_s9 + $0x8] sm:$0xff]  ;;  %v158_v45 = vld [vmem:[%s1026_s5] sm:$0xff]  ;;  %v202_v47 = vld [vmem:[%s1028_s7 + $0x18] sm:$0xff] }
  0x1f   :  { %272 = vmatpush.msrb.mxu0 %v255_v24  ;;  %185 = vmatpush.msra.mxu2 %v166_v26  ;;  %v246_v46 = vld [vmem:[%s1030_s9] sm:$0xff]  ;;  %v201_v48 = vld [vmem:[%s1028_s7 + $0x10] sm:$0xff]  ;;  %v200_v49 = vld [vmem:[%s1028_s7 + $0x8] sm:$0xff] }
  0x20   :  { %144 = vmatpush.msra.mxu1 %v93_v20  ;;  %223 = vmatpush.msra.mxu3 %v202_v47  ;;  %v199_v50 = vld [vmem:[%s1028_s7] sm:$0xff]  ;;  %v302_v51 = vld [vmem:[%s1032_s11 + $0x78] sm:$0xff]  ;;  %v301_v52 = vld [vmem:[%s1032_s11 + $0x70] sm:$0xff] }
  0x21   :  { %273 = vmatpush.msrb.mxu0 %v254_v27  ;;  %186 = vmatpush.msra.mxu2 %v165_v29  ;;  %v300_v53 = vld [vmem:[%s1032_s11 + $0x68] sm:$0xff]  ;;  %v299_v54 = vld [vmem:[%s1032_s11 + $0x60] sm:$0xff]  ;;  %v298_v55 = vld [vmem:[%s1032_s11 + $0x58] sm:$0xff] }
  0x22   :  { %145 = vmatpush.msra.mxu1 %v92_v25  ;;  %224 = vmatpush.msra.mxu3 %v201_v48  ;;  %v297_v56 = vld [vmem:[%s1032_s11 + $0x50] sm:$0xff]  ;;  %v556_v58 = vld [vmem:[%s1025_s4] ss:$0 sm:$0xff]  ;;  %v296_v63 = vld [vmem:[%s1032_s11 + $0x48] sm:$0xff] }
  0x23   :  { %274 = vmatpush.msrb.mxu0 %v253_v30  ;;  %187 = vmatpush.msra.mxu2 %v164_v33  ;;  %v295_v0 = vld [vmem:[%s1032_s11 + $0x40] sm:$0xff]  ;;  %v294_v1 = vld [vmem:[%s1032_s11 + $0x38] sm:$0xff]  ;;  %v293_v2 = vld [vmem:[%s1032_s11 + $0x30] sm:$0xff] }
  0x24   :  { %146 = vmatpush.msra.mxu1 %v91_v28  ;;  %225 = vmatpush.msra.mxu3 %v200_v49  ;;  %v292_v3 = vld [vmem:[%s1032_s11 + $0x28] sm:$0xff]  ;;  %v291_v4 = vld [vmem:[%s1032_s11 + $0x20] sm:$0xff]  ;;  %v290_v5 = vld [vmem:[%s1032_s11 + $0x18] sm:$0xff] }
  0x25   :  { %275 = vmatpush.msrb.mxu0 %v252_v34  ;;  %188 = vmatpush.msra.mxu2 %v163_v35  ;;  %v289_v6 = vld [vmem:[%s1032_s11 + $0x10] sm:$0xff]  ;;  %v288_v7 = vld [vmem:[%s1032_s11 + $0x8] sm:$0xff]  ;;  %v287_v8 = vld [vmem:[%s1032_s11] sm:$0xff] }
  0x26   :  { %147 = vmatpush.msra.mxu1 %v90_v31  ;;  %226 = vmatpush.msra.mxu3 %v199_v50  ;;  %v343_v9 = vld [vmem:[#allocation5 + $0x78] sm:$0xff]  ;;  %v342_v10 = vld [vmem:[#allocation5 + $0x70] sm:$0xff]  ;;  %v341_v11 = vld [vmem:[#allocation5 + $0x68] sm:$0xff] }
  0x27   :  { %537 = vmatmul.msk.f32.vlgmr.msra.gmra.mxu1 %vm128_vm1, %v89_v32  ;;  %276 = vmatpush.msrb.mxu0 %v251_v36  ;;  %v340_v12 = vld [vmem:[#allocation5 + $0x60] sm:$0xff]  ;;  %v339_v13 = vld [vmem:[#allocation5 + $0x58] sm:$0xff]  ;;  %v338_v14 = vld [vmem:[#allocation5 + $0x50] sm:$0xff] }
  0x28   :  { %189 = vmatpush.msra.mxu2 %v162_v37  ;;  %307 = vmatpush.msrb.mxu3 %v302_v51  ;;  %v337_v15 = vld [vmem:[#allocation5 + $0x48] sm:$0xff]  ;;  %v336_v16 = vld [vmem:[#allocation5 + $0x40] sm:$0xff]  ;;  %v335_v17 = vld [vmem:[#allocation5 + $0x38] sm:$0xff] }
  0x29   :  { %277 = vmatpush.msrb.mxu0 %v250_v38  ;;  %348 = vmatpush.msrb.mxu1 %v343_v9  ;;  %v558_v18 = vld [vmem:[%s1027_s6] ss:$0 sm:$0xff]  ;;  %v334_v26 = vld [vmem:[#allocation5 + $0x30] sm:$0xff]  ;;  %v333_v27 = vld [vmem:[#allocation5 + $0x28] sm:$0xff] }
  0x2a   :  { %190 = vmatpush.msra.mxu2 %v161_v39  ;;  %308 = vmatpush.msrb.mxu3 %v301_v52  ;;  %v557_v21 = vld [vmem:[%s1031_s10] ss:$0 sm:$0xff]  ;;  %v331_v29 = vld [vmem:[#allocation5 + $0x18] sm:$0xff]  ;;  %v330_v30 = vld [vmem:[#allocation5 + $0x10] sm:$0xff] }
  0x2b   :  { %278 = vmatpush.msrb.mxu0 %v249_v40  ;;  %349 = vmatpush.msrb.mxu1 %v342_v10  ;;  %v332_v28 = vld [vmem:[#allocation5 + $0x20] sm:$0xff]  ;;  %v329_v31 = vld [vmem:[#allocation5 + $0x8] sm:$0xff]  ;;  %v384_v33 = vld [vmem:[%s1036_s15 + $0x78] sm:$0xff] }
  0x2c   :  { %191 = vmatpush.msra.mxu2 %v160_v41  ;;  %309 = vmatpush.msrb.mxu3 %v300_v53  ;;  %v328_v32 = vld [vmem:[#allocation5] sm:$0xff]  ;;  %v383_v34 = vld [vmem:[%s1036_s15 + $0x70] sm:$0xff]  ;;  %v382_v35 = vld [vmem:[%s1036_s15 + $0x68] sm:$0xff] }
  0x2d   :  { %279 = vmatpush.msrb.mxu0 %v248_v42  ;;  %350 = vmatpush.msrb.mxu1 %v341_v11  ;;  %v381_v36 = vld [vmem:[%s1036_s15 + $0x60] sm:$0xff]  ;;  %v378_v47 = vld [vmem:[%s1036_s15 + $0x48] sm:$0xff]  ;;  %v376_v49 = vld [vmem:[%s1036_s15 + $0x38] sm:$0xff] }
  0x2e   :  { %192 = vmatpush.msra.mxu2 %v159_v43  ;;  %310 = vmatpush.msrb.mxu3 %v299_v54  ;;  %v559_v37 = vld [vmem:[%s1029_s8] ss:$0 sm:$0xff]  ;;  %v375_v50 = vld [vmem:[%s1036_s15 + $0x30] sm:$0xff]  ;;  %v374_v51 = vld [vmem:[%s1036_s15 + $0x28] sm:$0xff]  ;;  %s523_s8 = sshll.u32 %s672_s29, 4  ;;  %s524_s8 = int_to_ptr.vmem [resolvable:$true] %s523_s8 }
  0x2f   :  { %280 = vmatpush.msrb.mxu0 %v247_v44  ;;  %351 = vmatpush.msrb.mxu1 %v340_v12  ;;  %v560_v41 = vld [vmem:[%s1033_s12] ss:$0 sm:$0xff]  ;;  %v372_v53 = vld [vmem:[%s1036_s15 + $0x18] sm:$0xff]  ;;  %v371_v54 = vld [vmem:[%s1036_s15 + $0x10] sm:$0xff] }
  0x30   :  { %193 = vmatpush.msra.mxu2 %v158_v45  ;;  %311 = vmatpush.msrb.mxu3 %v298_v55  ;;  %v380_v45 = vld [vmem:[%s1036_s15 + $0x58] sm:$0xff]  ;;  %v377_v48 = vld [vmem:[%s1036_s15 + $0x40] sm:$0xff]  ;;  %v370_v55 = vld [vmem:[%s1036_s15 + $0x8] sm:$0xff] }
  0x31   :  { %281 = vmatpush.msrb.mxu0 %v246_v46  ;;  %352 = vmatpush.msrb.mxu1 %v339_v13  ;;  %v379_v46 = vld [vmem:[%s1036_s15 + $0x50] sm:$0xff]  ;;  %v373_v52 = vld [vmem:[%s1036_s15 + $0x20] sm:$0xff] }
  0x32   :  { %312 = vmatpush.msrb.mxu3 %v297_v56  ;;  %389 = vmatpush.msrb.mxu2 %v384_v33  ;;  %v369_v56 = vld [vmem:[%s1036_s15] sm:$0xff] }
  0x33   :  { %353 = vmatpush.msrb.mxu1 %v338_v14 }
  0x34   :  { %313 = vmatpush.msrb.mxu3 %v296_v63  ;;  %390 = vmatpush.msrb.mxu2 %v383_v34 }
  0x35   :  { %354 = vmatpush.msrb.mxu1 %v337_v15 }
  0x36   :  { %314 = vmatpush.msrb.mxu3 %v295_v0  ;;  %391 = vmatpush.msrb.mxu2 %v382_v35 }
  0x37   :  { %355 = vmatpush.msrb.mxu1 %v336_v16  ;;  %v666_v16 = vmov 1  }
  0x38   :  { %315 = vmatpush.msrb.mxu3 %v294_v1  ;;  %392 = vmatpush.msrb.mxu2 %v381_v36 }
  0x39   :  { %356 = vmatpush.msrb.mxu1 %v335_v17  ;;  %v667_v17 = vmov 2  }
  0x3a   :  { %316 = vmatpush.msrb.mxu3 %v293_v2  ;;  %393 = vmatpush.msrb.mxu2 %v380_v45  ;;  %v665_v2 = vmov 0  }
  0x3b   :  { %357 = vmatpush.msrb.mxu1 %v334_v26  ;;  %551 = vset.pattern.permute.xlu1 %v665_v2 }
  0x3c   :  { %317 = vmatpush.msrb.mxu3 %v292_v3  ;;  %394 = vmatpush.msrb.mxu2 %v379_v46  ;;  %v562_v3 = vld [vmem:[%s1037_s16] ss:$0 sm:$0xff]  ;;  %s670_s16 = smov 120  }
  0x3d   :  { %358 = vmatpush.msrb.mxu1 %v333_v27  ;;  %553 = vset.pattern.permute.xlu2 %v667_v17 }
  0x3e   :  { %318 = vmatpush.msrb.mxu3 %v291_v4  ;;  %395 = vmatpush.msrb.mxu2 %v378_v47 }
  0x3f   :  { %359 = vmatpush.msrb.mxu1 %v332_v28 }
  0x40   :  { %319 = vmatpush.msrb.mxu3 %v290_v5  ;;  %396 = vmatpush.msrb.mxu2 %v377_v48 }
  0x41   :  { %360 = vmatpush.msrb.mxu1 %v331_v29 }
  0x42   :  { %320 = vmatpush.msrb.mxu3 %v289_v6  ;;  %397 = vmatpush.msrb.mxu2 %v376_v49 }
  0x43   :  { %361 = vmatpush.msrb.mxu1 %v330_v30 }
  0x44   :  { %321 = vmatpush.msrb.mxu3 %v288_v7  ;;  %398 = vmatpush.msrb.mxu2 %v375_v50 }
  0x45   :  { %362 = vmatpush.msrb.mxu1 %v329_v31 }
  0x46   :  { %322 = vmatpush.msrb.mxu3 %v287_v8  ;;  %399 = vmatpush.msrb.mxu2 %v374_v51 }
  0x47   :  { %363 = vmatpush.msrb.mxu1 %v328_v32 }
  0x48   :  { %400 = vmatpush.msrb.mxu2 %v373_v52 }
  0x4a   :  { %401 = vmatpush.msrb.mxu2 %v372_v53 }
  0x4c   :  { %402 = vmatpush.msrb.mxu2 %v371_v54 }
  0x4e   :  { %403 = vmatpush.msrb.mxu2 %v370_v55 }
  0x50   :  { %404 = vmatpush.msrb.mxu2 %v369_v56 }
  0x93   :  { %v125_v57 = vpop.f32.mrf.mxu0 }
  0xa4   :  { %v149_v59 = vpop.f32.mrf.mxu1 }
  0xa5   :  { %v150_v60 = vadd.f32 %v149_v59, %v125_v57 }
  0xa7   :  { %v156_v61 = vadd.f32 %v556_v58, %v150_v60 }
  0xa9   :  { %v157_v62 = vmax.f32 %v156_v61, 0.0 }
  0xab   :  { %194 = vmatmul.f32.vlgmr.msra.gmra.mxu2 %v157_v62  ;;  %282 = vmatmul.f32.vlgmr.msrb.gmra.mxu0 %v157_v62  ;;  %v561_v62 = vld [vmem:[%s1035_s14] ss:$0 sm:$0xff]  ;;  %s669_s14 = smov 112  }
 0x128   :  { %v283_v23 = vpop.f32.mrf.mxu0 }
 0x129   :  { %v284_v24 = vadd.f32 %v557_v21, %v283_v23 }
 0x12b   :  { %v286_v25 = vmax.f32 %v284_v24, 0.0 }
 0x12e   :  { %v195_v19 = vpop.f32.mrf.mxu2 }
 0x12f   :  { %v196_v20 = vadd.f32 %v558_v18, %v195_v19 }
 0x131   :  { %v198_v22 = vmax.f32 %v196_v20, 0.0 }
 0x133   :  { %538 = vmatmul.msk.f32.vlgmr.msra.gmra.mxu3 %vm207_vm2, %v198_v22  ;;  %v668_v22 = vmov 3  }
 0x134   :  { %555 = vset.pattern.permute.xlu0 %v668_v22 }
 0x13b   :  { %323 = vmatmul.f32.vlgmr.msrb.gmra.mxu3 %v286_v25 }
 0x1b6   :  { %v228_v38 = vpop.f32.mrf.mxu3 }
 0x1b7   :  { %v229_v39 = vadd.f32 %v559_v37, %v228_v38 }
 0x1b9   :  { %v232_v40 = vsel %vm231_vm3, %v229_v39, -inf }
 0x1ba   :  { %233 = vmax.xlane.f32.xlu0 %v232_v40 }
 0x1be   :  { %v324_v42 = vpop.f32.mrf.mxu3 }
 0x1bf   :  { %v325_v43 = vadd.f32 %v560_v41, %v324_v42 }
 0x1c1   :  { %v327_v44 = vmax.f32 %v325_v43, 0.0 }
 0x1c3   :  { %364 = vmatmul.f32.vlgmr.msrb.gmra.mxu1 %v327_v44 }
 0x22d   :  { %v234_v57 = vpop.xlane.xlu0 %233 }
 0x22e   :  { %v235_v58 = vsub.f32 %v229_v39, %v234_v57 }
 0x230   :  { %v236_v59 = vmul.f32 1.442695, %v235_v58 }
 0x232   :  { %563 = vpow2.f32 %v236_v59 }
 0x238   :  { %v564_v60 = vpop.eup %563 }
 0x239   :  { %v238_v61 = vsel %vm231_vm3, %v564_v60, 0.0 }
 0x23a   :  { %239 = vadd.xlane.f32.xlu2 %v238_v61 }
 0x240   :  { %v365_v63 = vpop.f32.mrf.mxu1 }
 0x241   :  { %v366_v0 = vadd.f32 %v561_v62, %v365_v63 }
 0x243   :  { %v368_v1 = vmax.f32 %v366_v0, 0.0 }
 0x245   :  { %405 = vmatmul.f32.vlgmr.msrb.gmra.mxu2 %v368_v1 }
 0x2ad   :  { %v240_v9 = vpop.xlane.xlu2 %239 }
 0x2ae   :  { %565 = vrcp.f32 %v240_v9 }
 0x2b4   :  { %v566_v11 = vpop.eup %565 }
 0x2b5   :  { %v242_v12 = vmul.f32 %v566_v11, %v240_v9 }
 0x2b7   :  { %v243_v13 = vsub.f32 2.0, %v242_v12 }
 0x2b9   :  { %v244_v14 = vmul.f32 %v566_v11, %v243_v13 }
 0x2bb   :  { %v245_v15 = vmul.f32 %v564_v60, %v244_v14 }
 0x2c8   :  { %v406_v4 = vpop.f32.mrf.mxu2 }
 0x2c9   :  { %v407_v5 = vadd.f32 %v562_v3, %v406_v4 }
 0x2cb   :  { %v460_v6 = vsel %vm459_vm4, %v407_v5, -inf  ;;  %v431_v7 = vsel %vm430_vm5, %v407_v5, -inf  ;;  %v409_v8 = vsel %vm104_vm0, %v407_v5, -inf  ;;  %v489_v10 = vsel %vm488_vm6, %v407_v5, -inf }
 0x2cc   :  { %461 = vmax.xlane.f32.xlu1 %v460_v6  ;;  %432 = vmax.xlane.f32.xlu0 %v431_v7 }
 0x2cd   :  { %410 = vmax.xlane.f32.xlu2 %v409_v8 }
 0x2d4   :  { %490 = vmax.xlane.f32.xlu1 %v489_v10 }
 0x2ed   :  { %425 = vperm.xlu1 %551, %v245_v15  }
 0x2f5   :  { %552 = vset.pattern.permute.xlu1 %v666_v16 }
 0x2f6   :  { %450 = vperm.xlu1 %552, %v245_v15  }
 0x33f   :  { %v462_v18 = vpop.xlane.xlu1 %461  ;;  %v433_v19 = vpop.xlane.xlu0 %432 }
 0x340   :  { %v463_v20 = vsub.f32 %v407_v5, %v462_v18  ;;  %v434_v21 = vsub.f32 %v407_v5, %v433_v19  ;;  %v411_v31 = vpop.xlane.xlu2 %410 }
 0x341   :  { %v412_v32 = vsub.f32 %v407_v5, %v411_v31 }
 0x342   :  { %v464_v23 = vmul.f32 1.442695, %v463_v20  ;;  %v435_v24 = vmul.f32 1.442695, %v434_v21 }
 0x343   :  { %v413_v33 = vmul.f32 1.442695, %v412_v32 }
 0x344   :  { %567 = vpow2.f32 %v464_v23 }
 0x345   :  { %569 = vpow2.f32 %v435_v24 }
 0x347   :  { %v491_v25 = vpop.xlane.xlu1 %490 }
 0x348   :  { %v492_v26 = vsub.f32 %v407_v5, %v491_v25 }
 0x34a   :  { %v568_v27 = vpop.eup %567  ;;  %v493_v28 = vmul.f32 1.442695, %v492_v26 }
 0x34b   :  { %467 = vrot.lane.b32.xlu0 %v568_v27, %s669_s14  ;;  %v570_v29 = vpop.eup %569 }
 0x34c   :  { %571 = vpow2.f32 %v493_v28  ;;  %438 = vrot.lane.b32.xlu2 %v570_v29, %s670_s16 }
 0x34d   :  { %573 = vpow2.f32 %v413_v33 }
 0x352   :  { %v572_v30 = vpop.eup %571 }
 0x353   :  { %v574_v34 = vpop.eup %573 }
 0x354   :  { %496 = vrot.lane.b32.xlu2 %v572_v30, %s671_s28  ;;  %v415_v35 = vsel %vm104_vm0, %v574_v34, 0.0 }
 0x35c   :  { %479 = vperm.xlu2 %553, %v245_v15  }
 0x35f   :  { %v426_v44 = vpop.permute.xlu1 %425 }
 0x364   :  { %554 = vset.pattern.permute.xlu2 %v668_v22 }
 0x365   :  { %508 = vperm.xlu2 %554, %v245_v15  }
 0x368   :  { %v451_v49 = vpop.permute.xlu1 %450 }
 0x375   :  { %416 = vadd.xlane.f32.xlu0 %v415_v35 }
 0x3a6   :  { %v439_v36 = vpop.permute.xlu2 %438 }
 0x3a7   :  { %v441_v37 = vsel %vm104_vm0, %v439_v36, 0.0 }
 0x3a8   :  { %442 = vadd.xlane.f32.xlu0 %v441_v37 }
 0x3ae   :  { %v497_v38 = vpop.permute.xlu2 %496 }
 0x3af   :  { %v499_v39 = vsel %vm104_vm0, %v497_v38, 0.0 }
 0x3b0   :  { %500 = vadd.xlane.f32.xlu0 %v499_v39 }
 0x3b6   :  { %v480_v61 = vpop.permute.xlu2 %479 }
 0x3bd   :  { %v468_v40 = vpop.permute.xlu0 %467 }
 0x3be   :  { %v470_v41 = vsel %vm104_vm0, %v468_v40, 0.0 }
 0x3bf   :  { %471 = vadd.xlane.f32.xlu1 %v470_v41  ;;  %v509_v2 = vpop.permute.xlu2 %508 }
 0x3e8   :  { %v417_v42 = vpop.xlane.xlu0 %416 }
 0x41b   :  { %v443_v43 = vpop.xlane.xlu0 %442 }
 0x41c   :  { %575 = vrcp.f32 %v443_v43 }
 0x422   :  { %v576_v45 = vpop.eup %575 }
 0x423   :  { %v445_v46 = vmul.f32 %v576_v45, %v443_v43  ;;  %v501_v52 = vpop.xlane.xlu0 %500 }
 0x424   :  { %577 = vrcp.f32 %v501_v52 }
 0x425   :  { %v446_v47 = vsub.f32 2.0, %v445_v46 }
 0x427   :  { %v447_v48 = vmul.f32 %v576_v45, %v446_v47 }
 0x429   :  { %v448_v50 = vmul.f32 %v570_v29, %v447_v48 }
 0x42a   :  { %v578_v54 = vpop.eup %577 }
 0x42b   :  { %v453_v51 = vmul.f32 %v451_v49, %v448_v50  ;;  %v503_v56 = vmul.f32 %v578_v54, %v501_v52 }
 0x42d   :  { %455 = vrot.lane.b32.xlu2 %v453_v51, %s670_s16  ;;  %v504_v59 = vsub.f32 2.0, %v503_v56 }
 0x42f   :  { %v505_v63 = vmul.f32 %v578_v54, %v504_v59 }
 0x431   :  { %v506_v1 = vmul.f32 %v572_v30, %v505_v63 }
 0x432   :  { %v472_v53 = vpop.xlane.xlu1 %471 }
 0x433   :  { %579 = vrcp.f32 %v472_v53  ;;  %v511_v3 = vmul.f32 %v509_v2, %v506_v1 }
 0x434   :  { %581 = vrcp.f32 %v417_v42 }
 0x439   :  { %v580_v55 = vpop.eup %579 }
 0x43a   :  { %v474_v57 = vmul.f32 %v580_v55, %v472_v53  ;;  %v582_v4 = vpop.eup %581 }
 0x43b   :  { %v419_v5 = vmul.f32 %v582_v4, %v417_v42 }
 0x43c   :  { %v475_v58 = vsub.f32 2.0, %v474_v57 }
 0x43d   :  { %v420_v6 = vsub.f32 2.0, %v419_v5 }
 0x43e   :  { %v476_v60 = vmul.f32 %v580_v55, %v475_v58 }
 0x43f   :  { %v421_v8 = vmul.f32 %v582_v4, %v420_v6 }
 0x440   :  { %v477_v62 = vmul.f32 %v568_v27, %v476_v60 }
 0x441   :  { %v422_v9 = vmul.f32 %v574_v34, %v421_v8 }
 0x442   :  { %v482_v0 = vmul.f32 %v480_v61, %v477_v62 }
 0x443   :  { %v428_v11 = vmul.f32 %v426_v44, %v422_v9 }
 0x444   :  { %484 = vrot.lane.b32.xlu2 %v482_v0, %s669_s14 }
 0x44c   :  { %513 = vrot.lane.b32.xlu2 %v511_v3, %s671_s28 }
 0x487   :  { %v456_v7 = vpop.permute.xlu2 %455 }
 0x488   :  { %v458_v12 = vadd.f32 %v456_v7, %v428_v11 }
 0x49e   :  { %v485_v10 = vpop.permute.xlu2 %484 }
 0x49f   :  { %v487_v13 = vadd.f32 %v485_v10, %v458_v12 }
 0x4a6   :  { %v514_v14 = vpop.permute.xlu2 %513 }
 0x4a7   :  { %v516_v15 = vadd.f32 %v514_v14, %v487_v13 }
 0x4a9   :  { %517 = vst.msk [vmem:[#allocation7] sm:$0xff] %vm104_vm0, %v516_v15 }
 0x4aa   :  { %528 = dma.vmem_to_hbm [thread:$0]  %s524_s8, 128, %s526_s30, [#allocation4]  }
 0x4ab   :  { %659 = dma.done.wait [#allocation4], 128  }
 0x4ac   :  { %660 = vsyncadd [#allocation4], 4294967168 }
 0x4ad   :  { %533 = vsyncpa [#allocation3], 1 }
 0x4ae   :  { %534 = vsyncpa [#allocation6], 1 }
 0x4af   :  { %535 = vsyncpa [#allocation4], 1 }

</bundles_post_ra>
